<compile_context>
chip_gen: v7x
topology: tpu7x:2x2x1
jax: 0.10.0
libtpu: 0.0.40
codegen_flags: <defaults>
</compile_context>

<pallas_src>
import jax
import jax.numpy as jnp
from jax import lax
from jax.experimental import pallas as pl
from jax.experimental.pallas import tpu as pltpu


def _round_up(x, m):
    return ((x + m - 1) // m) * m


def _vmem_capacity_bytes():
    """Per-core VMEM capacity; conservative fallback if the query fails."""
    try:
        info = pltpu.get_tpu_info()
        cap = getattr(info, "vmem_capacity_bytes", None)
        if cap:
            return int(cap)
    except Exception:
        pass
    return 64 * 1024 * 1024  # v7x has the smallest per-TC VMEM (64 MiB)


def _linear_kernel_f32_out(x_ref, w_ref, b_ref, o_ref):
    # f32 output: the resident output tile *is* the K-reduction accumulator.
    k = pl.program_id(2)

    @pl.when(k == 0)
    def _():
        o_ref[...] = jnp.zeros_like(o_ref)

    # x @ w.T on the MXU; weight kept in PyTorch (N, K) layout ("NT" matmul).
    o_ref[...] += lax.dot_general(
        x_ref[...], w_ref[...],
        dimension_numbers=(((1,), (1,)), ((), ())),
        preferred_element_type=jnp.float32,
    )

    @pl.when(k == pl.num_programs(2) - 1)
    def _():
        o_ref[...] += b_ref[...].astype(jnp.float32)


def _linear_kernel_generic(x_ref, w_ref, b_ref, o_ref, acc_ref):
    # Non-f32 output: accumulate in an f32 VMEM scratch, downcast on last step.
    k = pl.program_id(2)

    @pl.when(k == 0)
    def _():
        acc_ref[...] = jnp.zeros_like(acc_ref)

    acc_ref[...] += lax.dot_general(
        x_ref[...], w_ref[...],
        dimension_numbers=(((1,), (1,)), ((), ())),
        preferred_element_type=jnp.float32,
    )

    @pl.when(k == pl.num_programs(2) - 1)
    def _():
        o_ref[...] = (acc_ref[...] + b_ref[...].astype(jnp.float32)).astype(o_ref.dtype)


def distributed_linear(x, weight, bias, *, depth=1, tm=512, tn=512, tk=1024):
    """Pallas implementation of Distributed(nn.Linear(K, N), depth).

    x      : (d0, d1, ..., d_depth, K)
    weight : (N, K)   -- PyTorch nn.Linear layout (used as-is, no transpose)
    bias   : (N,)
    returns: (d0, d1, ..., d_depth, N)
    """
    shape = x.shape
    n = depth + 1
    shape_head, shape_tail = shape[:n], shape[n:]
    assert len(shape_tail) == 1, "inner module is a Linear over the last dim"
    K = shape_tail[0]
    N = weight.shape[0]
    assert weight.shape[1] == K and bias.shape == (N,)

    # --- glue: flatten leading dims (== torch .view(prod(head), K)) ----------
    M = 1
    for d in shape_head:
        M *= d
    x2 = x.reshape(M, K)

    in_bpe = jnp.dtype(x.dtype).itemsize
    out_dtype = x.dtype
    out_bpe = jnp.dtype(out_dtype).itemsize
    f32_out = jnp.dtype(out_dtype) == jnp.dtype(jnp.float32)

    # Sublane minimum depends on dtype packing (f32 -> 8, bf16 -> 16, int8 -> 32).
    sublane = {4: 8, 2: 16, 1: 32}.get(in_bpe, 8)

    # --- tile sizing ----------------------------------------------------------
    tm_eff = _round_up(min(tm, _round_up(M, sublane)), sublane)
    tn_eff = _round_up(min(tn, _round_up(N, 128)), 128)
    tk_eff = _round_up(min(tk, _round_up(K, 128)), 128)

    vmem_cap = _vmem_capacity_bytes()
    budget = int(0.60 * vmem_cap)  # leave headroom for compiler internals

    def footprint(tm_, tn_, tk_):
        b = (2 * tm_ * tk_ * in_bpe       # x tile, double buffered
             + 2 * tn_ * tk_ * in_bpe     # weight tile, double buffered
             + 2 * tn_ * out_bpe          # bias row
             + 2 * tm_ * tn_ * out_bpe)   # output tile, double buffered
        if not f32_out:
            b += tm_ * tn_ * 4            # f32 accumulator scratch
        return b

    # Shrink (largest dim first) only if the footprint exceeds this chip's budget.
    while footprint(tm_eff, tn_eff, tk_eff) > budget:
        if tk_eff >= max(tm_eff, tn_eff) and tk_eff > 512:
            tk_eff = _round_up(tk_eff // 2, 128)
        elif tn_eff >= tm_eff and tn_eff > 256:
            tn_eff = _round_up(tn_eff // 2, 128)
        elif tm_eff > 2 * sublane:
            tm_eff = _round_up(tm_eff // 2, sublane)
        else:
            break

    # --- pad K only (reduction axis must be zero-filled; M/N edge blocks are
    # partial and their garbage only touches outputs that are never stored) ---
    K_pad = _round_up(K, tk_eff)
    if K_pad != K:
        x2 = jnp.pad(x2, ((0, 0), (0, K_pad - K)))
        weight = jnp.pad(weight, ((0, 0), (0, K_pad - K)))
    b2 = bias.reshape(1, N)

    grid_m = pl.cdiv(M, tm_eff)
    grid_n = pl.cdiv(N, tn_eff)
    grid_k = K_pad // tk_eff

    # v7x has 2 TensorCores sharded over the "parallel" grid axes: make sure
    # there are >= 2 parallel blocks so neither core idles.
    if grid_m * grid_n == 1:
        if M > sublane:
            tm_eff = _round_up(max(tm_eff // 2, sublane), sublane)
            grid_m = pl.cdiv(M, tm_eff)
        elif N > 128:
            tn_eff = _round_up(max(tn_eff // 2, 128), 128)
            grid_n = pl.cdiv(N, tn_eff)

    grid = (grid_m, grid_n, grid_k)

    # --- accurate VMEM limit (~1.3x footprint) and realistic cost estimate ----
    tile_bytes = footprint(tm_eff, tn_eff, tk_eff)
    vmem_limit = int(min(max(int(1.3 * tile_bytes) + (2 << 20), 16 << 20),
                         int(0.9 * vmem_cap)))

    cost = pl.CostEstimate(
        flops=2 * M * N * K_pad,
        bytes_accessed=(in_bpe * (M * K_pad * grid_n + N * K_pad * grid_m)
                        + out_bpe * (M * N + N)),
        transcendentals=0,
    )

    if f32_out:
        kernel = _linear_kernel_f32_out
        scratch_shapes = []
    else:
        kernel = _linear_kernel_generic
        scratch_shapes = [pltpu.VMEM((tm_eff, tn_eff), jnp.float32)]

    out2 = pl.pallas_call(
        kernel,
        out_shape=jax.ShapeDtypeStruct((M, N), out_dtype),
        grid_spec=pltpu.PrefetchScalarGridSpec(
            num_scalar_prefetch=0,
            grid=grid,
            in_specs=[
                pl.BlockSpec((tm_eff, tk_eff), lambda i, j, k: (i, k)),  # x rows
                pl.BlockSpec((tn_eff, tk_eff), lambda i, j, k: (j, k)),  # weight (N,K)
                pl.BlockSpec((1, tn_eff), lambda i, j, k: (0, j)),       # bias row
            ],
            out_specs=pl.BlockSpec((tm_eff, tn_eff), lambda i, j, k: (i, j)),
            scratch_shapes=scratch_shapes,
        ),
        compiler_params=pltpu.CompilerParams(
            dimension_semantics=("parallel", "parallel", "arbitrary"),
            vmem_limit_bytes=vmem_limit,
        ),
        cost_estimate=cost,
    )(x2, weight, b2)

    # --- glue: un-flatten (== Distributed.view_tuple) --------------------------
    return out2.reshape(*shape_head, N)


if __name__ == "__main__":
    B, S, H_IN, H_OUT = 2, 8, 32, 32

    key = jax.random.PRNGKey(0)
    kx, kw, kb = jax.random.split(key, 3)

    x = jax.random.normal(kx, (B, S, H_IN), dtype=jnp.float32)
    # deterministic synthetic nn.Linear parameters (PyTorch layout (out, in))
    bound = 1.0 / (H_IN ** 0.5)
    weight = jax.random.uniform(kw, (H_OUT, H_IN), jnp.float32, -bound, bound)
    bias = jax.random.uniform(kb, (H_OUT,), jnp.float32, -bound, bound)

    out = distributed_linear(x, weight, bias, depth=1)
    out = jax.block_until_ready(out)

    # reference check (pure JAX) of the Distributed(Linear) semantics
    ref = (x.reshape(B * S, H_IN) @ weight.T + bias).reshape(B, S, H_OUT)
    assert out.shape == (B, S, H_OUT)
    assert jnp.allclose(out, ref, atol=1e-5, rtol=1e-5)

    print("KERNEL_OK")
</pallas_src>

<mosaic_0001>
module attributes {stable_mosaic.version = 11 : i64} {
  func.func @_linear_kernel_f32_out(%arg0: i32, %arg1: i32, %arg2: i32, %arg3: memref<8x128xf32, #tpu.memory_space<vmem>>, %arg4: memref<128x128xf32, #tpu.memory_space<vmem>>, %arg5: memref<1x128xf32, #tpu.memory_space<vmem>>, %arg6: memref<8x128xf32, #tpu.memory_space<vmem>>) attributes {dimension_semantics = [#tpu.dimension_semantics<parallel>, #tpu.dimension_semantics<parallel>, #tpu.dimension_semantics<arbitrary>], iteration_bounds = array<i64: 2, 1, 1>, scalar_prefetch = 0 : i64, scratch_operands = 0 : i64, tpu.core_type = #tpu.core_type<tc>, window_params = [{transform_indices = @transform_0, window_bounds = array<i64: 8, 128>}, {transform_indices = @transform_1, window_bounds = array<i64: 128, 128>}, {transform_indices = @transform_2, window_bounds = array<i64: 1, 128>}, {transform_indices = @transform_3, window_bounds = array<i64: 8, 128>}]} {
    %c0_i32 = arith.constant 0 : i32
    %0 = arith.cmpi eq, %arg2, %c0_i32 : i32
    %1 = arith.extui %0 : i1 to i32
    %c0_i32_0 = arith.constant 0 : i32
    %2 = arith.cmpi ne, %1, %c0_i32_0 : i32
    scf.if %2 {
      %cst_10 = arith.constant 0.000000e+00 : f32
      %12 = vector.broadcast %cst_10 : f32 to vector<8x128xf32>
      %c0_11 = arith.constant 0 : index
      %c0_12 = arith.constant 0 : index
      %13 = vector.load %arg6[%c0_11, %c0_12] : memref<8x128xf32, #tpu.memory_space<vmem>>, vector<8x128xf32>
      tpu.vector_store %arg6[%c0_11, %c0_12], %12 {strides = array<i32>} : memref<8x128xf32, #tpu.memory_space<vmem>>, vector<8x128xf32>,
    } else {
    }
    %c0 = arith.constant 0 : index
    %c0_1 = arith.constant 0 : index
    %3 = vector.load %arg6[%c0, %c0_1] : memref<8x128xf32, #tpu.memory_space<vmem>>, vector<8x128xf32>
    %c0_2 = arith.constant 0 : index
    %c0_3 = arith.constant 0 : index
    %4 = vector.load %arg3[%c0_2, %c0_3] : memref<8x128xf32, #tpu.memory_space<vmem>>, vector<8x128xf32>
    %c0_4 = arith.constant 0 : index
    %c0_5 = arith.constant 0 : index
    %5 = vector.load %arg4[%c0_4, %c0_5] : memref<128x128xf32, #tpu.memory_space<vmem>>, vector<128x128xf32>
    %cst = arith.constant dense<0.000000e+00> : vector<8x128xf32>
    %6 = tpu.matmul %4, %5, %cst {dimension_numbers = #tpu.dot_dimension_numbers<[1], [1], [0], [0], [0, 0, 1, 0], [], []>} : vector<8x128xf32>, vector<128x128xf32>, vector<8x128xf32> -> vector<8x128xf32>
    %7 = arith.addf %3, %6 : vector<8x128xf32>
    %c0_6 = arith.constant 0 : index
    %c0_7 = arith.constant 0 : index
    %8 = vector.load %arg6[%c0_6, %c0_7] : memref<8x128xf32, #tpu.memory_space<vmem>>, vector<8x128xf32>
    tpu.vector_store %arg6[%c0_6, %c0_7], %7 {strides = array<i32>} : memref<8x128xf32, #tpu.memory_space<vmem>>, vector<8x128xf32>,
    %c0_i32_8 = arith.constant 0 : i32
    %9 = arith.cmpi eq, %arg2, %c0_i32_8 : i32
    %10 = arith.extui %9 : i1 to i32
    %c0_i32_9 = arith.constant 0 : i32
    %11 = arith.cmpi ne, %10, %c0_i32_9 : i32
    scf.if %11 {
      %c0_10 = arith.constant 0 : index
      %c0_11 = arith.constant 0 : index
      %12 = vector.load %arg6[%c0_10, %c0_11] : memref<8x128xf32, #tpu.memory_space<vmem>>, vector<8x128xf32>
      %c0_12 = arith.constant 0 : index
      %c0_13 = arith.constant 0 : index
      %13 = vector.load %arg5[%c0_12, %c0_13] : memref<1x128xf32, #tpu.memory_space<vmem>>, vector<1x128xf32>
      %14 = vector.broadcast %13 : vector<1x128xf32> to vector<8x128xf32>
      %15 = arith.addf %12, %14 : vector<8x128xf32>
      %c0_14 = arith.constant 0 : index
      %c0_15 = arith.constant 0 : index
      %16 = vector.load %arg6[%c0_14, %c0_15] : memref<8x128xf32, #tpu.memory_space<vmem>>, vector<8x128xf32>
      tpu.vector_store %arg6[%c0_14, %c0_15], %15 {strides = array<i32>} : memref<8x128xf32, #tpu.memory_space<vmem>>, vector<8x128xf32>,
    } else {
    }
    return
  }
  func.func @transform_0(%arg0: i32, %arg1: i32, %arg2: i32) -> (i32, i32) {
    %c0_i32 = arith.constant 0 : i32
    return %arg0, %arg2 : i32, i32
  }
  func.func @transform_1(%arg0: i32, %arg1: i32, %arg2: i32) -> (i32, i32) {
    %c0_i32 = arith.constant 0 : i32
    return %arg1, %arg2 : i32, i32
  }
  func.func @transform_2(%arg0: i32, %arg1: i32, %arg2: i32) -> (i32, i32) {
    %c0_i32 = arith.constant 0 : i32
    %c0_i32_0 = arith.constant 0 : i32
    return %c0_i32, %arg1 : i32, i32
  }
  func.func @transform_3(%arg0: i32, %arg1: i32, %arg2: i32) -> (i32, i32) {
    %c0_i32 = arith.constant 0 : i32
    return %arg0, %arg1 : i32, i32
  }
}

</mosaic_0001>

<bundles_post_ra>
// kernel: tpu_custom_call.1
= control target key start
LH: loop header
LB: loop body
LE: loop exit
PB: predicated region body
PF: predicated region fallthrough
CT: control target
= control target key end

     0   :  { %8 = vsyncpa [#allocation3], 0  ;;  %s1030_s0 = inlined_call_operand.hbm [shape: f32[16,128], index: 0, kind: input, shape index: {}]   ;;  %s1031_s1 = inlined_call_operand.hbm [shape: f32[32,128], index: 1, kind: input, shape index: {}]   ;;  %s1032_s2 = inlined_call_operand.vmem [shape: f32[1,32], index: 2, kind: input, shape index: {}]   ;;  %s1033_s3 = inlined_call_operand.hbm [shape: f32[16,32], index: 3, kind: output, shape index: {}]  }
   0x1   :  { %10 = vsyncpa [#allocation3 + $0x1], 0 }
   0x2   :  { %11 = vsyncpa [#allocation6], 0 }
   0x3   :  { %12 = vsyncpa [#allocation4], 0 }
   0x4   :  { %14 = vsyncpa [#allocation4 + $0x1], 0  ;;  %s821_s12 = smov 0   ;;  %s823_s13 = smov 0  }
   0x5   :  { %s825_s14 = smov 0   ;;  %s827_s15 = smov 0  }
   0x6   :  { %s829_s16 = smov 0   ;;  %s831_s17 = smov 0  }
   0x7 LB: > { %s852_s18 = sadd.s32 4294967295, %s791_s17   ;;  %s490_s19 = sadd.s32 4294967294, %s791_s17   ;;  %s791_s17 = sphi %s831_s17, %s20_s17   ;;  %s787_s16 = sphi %s829_s16, %s1053_s16   ;;  %s783_s15 = sphi %s827_s15, %s1052_s15   ;;  %s779_s14 = sphi %s825_s14, %s1051_s14   ;;  %s775_s13 = sphi %s823_s13, %s1050_s13   ;;  %s771_s12 = sphi %s821_s12, %s1049_s12  }
   0x8   : > { %s39_s20 = sadd.s32 1, %s787_s16  ;;  %s48_s21 = sadd.s32 1, %s779_s14 }
   0x9   : > { %p41_p0 = scmp.ge.s32.totalorder %s39_s20, 2  ;;  %p55_p1 = scmp.ne.s32.totalorder %s779_s14, %s775_s13 }
   0xa   : > { %p56_p2 = scmp.eq.s32.totalorder %s791_s17, 0  ;;  %p61_p3 = scmp.ne.s32.totalorder %s775_s13, %s771_s12 }
   0xb   : > { %s1055_s20 = smov (%p41_p0, %s39_s20), 0  ;;  %p1034_p5 = scmp.eq.s32.totalorder %s852_s18, 0 }
   0xc   : > { %p864_p4 = por %p56_p2, %p55_p1  ;;  %s43_s23 = ssub.s32 %s787_s16, %s1055_s20 }
   0xd   : > { %p141_p6 = scmp.eq.s32.totalorder %s852_s18, 1  ;;  %p46_p7 = scmp.eq.s32.totalorder %s43_s23, 0 }
   0xe   : > { %p874_p8 = por %p1034_p5, %p61_p3  ;;  %p147_p10 = scmp.eq.s32.totalorder %s490_s19, 1 }
   0xf   : > { %p878_p9 = por %p141_p6, %p55_p1  ;;  %p491_p12 = scmp.ge.s32.totalorder %s791_s17, 1 }
  0x10   : > { %s1038_s24 = scalar_select %p874_p8, 1, 0 }
  0x11   : > { %s1039_s25 = scalar_select %p878_p9, 1, 0 }
  0x12   : > { %s883_s26 = scalar_select %p46_p7, %s779_s14, %s48_s21  }
  0x13   : > { %p885_p11 = por %p147_p10, %p61_p3  ;;  %p154_p13 = scmp.lt.s32.totalorder %s791_s17, 3 }
  0x15   : > { %s1040_s27 = scalar_select %p885_p11, 1, 0 }
  0x16   : > { %p891_p0 = pnand %p491_p12, %p154_p13 }
  0x17   : > { %p492_p1 = scmp.ne.s32.totalorder (!%p891_p0), %s852_s18, 0 }
  0x18   : > { %158 = sbr.rel (%p891_p0) target bundleno = 56 (0x38), region = 12 }
  0x1f   : > { %162 = sbr.rel (%p492_p1) target bundleno = 56 (0x38), region = 16 }
  0x26   : > { %168 = vsyncadd [#allocation6], 1536  ;;  %s793_s29 = smov [#allocation5]   ;;  %s653_s6 = scalar_lea.hbm %s1031_s1, 512 }
  0x27   : > { %s174_s30 = sshll.u32 %s793_s29, 4  ;;  %p654_p2 = scmp.ne.s32.totalorder %s1031_s1, %s653_s6  ;;  %s175_s30 = int_to_ptr.vmem [resolvable:$true] %s174_s30 }
  0x28   : > { %p657_p3 = scmp.lt.u32.totalorder %s653_s6, %s1031_s1 }
  0x2a   : > { %p659_p6 = pnand %p657_p3, %p654_p2 }
  0x2c   : > { %662 = shalt.err (!%p659_p6)
}
  0x2d   : > { %s663_s11 = scalar_lea.vmem %s175_s30, 512  ;;  %s667_s19 = scalar_lea.vmem %s175_s30, 2048 }
  0x2e   : > { %p664_p7 = scmp.ne.s32.totalorder %s175_s30, %s663_s11  ;;  %p668_p10 = scmp.lt.s32.totalorder %s175_s30, %s175_s30 }
  0x2f   : > { %p669_p12 = scmp.lt.s32.totalorder %s667_s19, %s663_s11 }
  0x31   : > { %p670_p13 = por %p669_p12, %p668_p10 }
  0x33   : > { %p671_p1 = pnand %p670_p13, %p664_p7 }
  0x35   : > { %674 = shalt.err (!%p671_p1)
}
  0x36   : > { %s794_s21 = smov 128   ;;  %s795_s23 = smov 8  }
  0x37   : > { %180 = dma.hbm_to_vmem [thread:$0]  %s1031_s1, 512, %s175_s30, [#allocation6], %s794_s21, %s794_s21, %s795_s23  }
  0x38 PF: > { %p596_p3 = scmp.lt.s32.totalorder %s791_s17, 2  ;;  %s194_s5 = sand.u32 1, %s779_s14  }
  0x39   : > { %s496_s6 = sshll.u32 %s787_s16, 7  ;;  %s495_s7 = sshll.u32 %s194_s5, 3 }
  0x3a   : > { %s917_s10 = scalar_lea.hbm %s1030_s0, %s496_s6  ;;  %s198_s30 = scalar_lea.vmem [#allocation2], %s495_s7 }
  0x3b   : > { %s206_s11 = sshll.u32 %s198_s30, 4  ;;  %p921_p6 = pnand %p596_p3, %p864_p4  ;;  %s925_s11 = int_to_ptr.vmem [resolvable:$true] %s206_s11 }
  0x3c   : > { %s195_s21 = scalar_lea.sflag [#allocation3], %s194_s5  ;;  %s675_s23 = scalar_lea.hbm %s917_s10, 128 }
  0x3d   : > { %p676_p7 = scmp.ne.s32.totalorder %s917_s10, %s675_s23  ;;  %p677_p10 = pneg %p921_p6 }
  0x3e   : > { %s680_s22 = scalar_lea.hbm %s1030_s0, 256  ;;  %p681_p4 = scmp.lt.u32.totalorder %s917_s10, %s1030_s0 }
  0x3f   : > { %p678_p12 = pnand %p677_p10, %p676_p7  ;;  %p682_p1 = scmp.lt.u32.totalorder %s680_s22, %s675_s23 }
  0x40   : > { %p684_p2 = scmp.lt.u32.totalorder %s675_s23, %s917_s10 }
  0x41   : > { %p679_p13 = pneg %p678_p12  ;;  %p683_p3 = por %p682_p1, %p681_p4 }
  0x43   : > { %p685_p5 = por %p684_p2, %p683_p3 }
  0x45   : > { %p686_p11 = pnand %p685_p5, %p679_p13 }
  0x47   : > { %689 = shalt.err (!%p686_p11)
}
  0x48   : > { %s690_s5 = scalar_lea.vmem %s925_s11, 128  ;;  %s796_s8 = smov [#allocation2]  }
  0x49   : > { %p691_p7 = scmp.ne.s32.totalorder %s925_s11, %s690_s5  ;;  %s695_s9 = sshll.u32 %s796_s8, 4  ;;  %s696_s9 = int_to_ptr.vmem [resolvable:$false] %s695_s9 }
  0x4a   : > { %s697_s30 = scalar_lea.vmem %s696_s9, 256  ;;  %p698_p8 = scmp.lt.s32.totalorder %s925_s11, %s696_s9 }
  0x4b   : > { %p693_p12 = pnand %p691_p7, %p677_p10  ;;  %p699_p4 = scmp.lt.s32.totalorder %s697_s30, %s690_s5 }
  0x4d   : > { %p694_p9 = pneg %p693_p12  ;;  %p700_p1 = por %p699_p4, %p698_p8 }
  0x4f   : > { %p701_p2 = pnand %p700_p1, %p694_p9 }
  0x51   : > { %704 = shalt.err (!%p701_p2)
}
  0x52   : > { %591 = dma.hbm_to_vmem [thread:$0]  (!%p921_p6), %s917_s10, 128, %s925_s11, %s195_s21  }
  0x53   : > { %215 = sbr.rel (%p891_p0) target bundleno = 388 (0x184), region = 32  ;;  %s955_s23 = sand.u32 (!%p891_p0), 1, %s775_s13  }
  0x54   : > { %s498_s29 = sshll.u32 (!%p891_p0), %s955_s23, 3  ;;  %s218_s4 = scalar_lea.sflag (!%p891_p0), [#allocation3], %s955_s23 }
  0x55   : > { %s961_s22 = scalar_lea.vmem (!%p891_p0), [#allocation2], %s498_s29  ;;  %p1043_p5 = scmp.ne.s32.totalorder (!%p891_p0), %s1038_s24, 0 }
  0x5a   : > { %758 = dma.done.wait (%p1043_p5), %s218_s4, 128  }
  0x5b   : > { %760 = vsyncadd (%p1043_p5), %s218_s4, 4294967168  ;;  %p1044_p8 = scmp.eq.s32.totalorder %s852_s18, 0 }
  0x5d   : > { %762 = dma.done.wait (%p1044_p8), [#allocation6], 2048   ;;  %p1045_p9 = pmov %p1044_p8 }
  0x5e   : > { %v797_v0 = vmov 0.0|0.0   ;;  %vm798_vm0 = vmmov 0   ;;  %v799_v1 = vmov 0.0   ;;  %v264_v2 = vld [vmem:[#allocation5] sm:$0xff]  ;;  %v265_v3 = vld [vmem:[#allocation5 + $0x8] sm:$0xff]  ;;  %v266_v5 = vld [vmem:[#allocation5 + $0x10] sm:$0xff] }
  0x5f   : > { %764 = vsyncadd (%p1045_p9), [#allocation6], 4294965248  ;;  %558 = vmatprep.subr.bf16.mxu0 %v797_v0  ;;  %555 = vmatprep.mubr.msk.f32.mxu0 %vm798_vm0, %v799_v1  ;;  %v559_v4 = vpack.c.bf16 %v265_v3, %v264_v2  ;;  %v267_v6 = vld [vmem:[#allocation5 + $0x18] sm:$0xff]  ;;  %v268_v8 = vld [vmem:[#allocation5 + $0x20] sm:$0xff]  ;;  %s503_s28 = sshll.u32 %s783_s15, 7  ;;  %s250_s10 = scalar_lea.vmem [#allocation7], %s498_s29 }
  0x60   : > { %v562_v7 = vpack.c.bf16 %v267_v6, %v266_v5  ;;  %v269_v9 = vld [vmem:[#allocation5 + $0x28] sm:$0xff]  ;;  %v270_v11 = vld [vmem:[#allocation5 + $0x30] sm:$0xff]  ;;  %v271_v12 = vld [vmem:[#allocation5 + $0x38] sm:$0xff]  ;;  %s380_s11 = sshll.u32 %s250_s10, 4  ;;  %s981_s6 = scalar_lea.hbm %s1033_s3, %s503_s28  ;;  %s983_s11 = int_to_ptr.vmem [resolvable:$true] %s380_s11 }
  0x61   : > { %560 = vmatpush3.bf16.xpose.msra.mxu0 %v559_v4  ;;  %v565_v10 = vpack.c.bf16 %v269_v9, %v268_v8  ;;  %v568_v13 = vpack.c.bf16 %v271_v12, %v270_v11  ;;  %v272_v14 = vld [vmem:[#allocation5 + $0x40] sm:$0xff]  ;;  %v273_v15 = vld [vmem:[#allocation5 + $0x48] sm:$0xff]  ;;  %v274_v17 = vld [vmem:[#allocation5 + $0x50] sm:$0xff]  ;;  %s366_s7 = scalar_lea.sflag [#allocation4], %s955_s23  ;;  %s705_s5 = scalar_lea.vmem %s983_s11, 128 }
  0x62   : > { %561 = vmatprep.subr.bf16.mxu0 %v797_v0  ;;  %v571_v16 = vpack.c.bf16 %v273_v15, %v272_v14  ;;  %v275_v18 = vld [vmem:[#allocation5 + $0x58] sm:$0xff]  ;;  %v276_v20 = vld [vmem:[#allocation5 + $0x60] sm:$0xff]  ;;  %v277_v21 = vld [vmem:[#allocation5 + $0x68] sm:$0xff]  ;;  %p706_p11 = scmp.ne.s32.totalorder %s983_s11, %s705_s5  ;;  %p1046_p0 = scmp.ne.s32.totalorder %s1039_s25, 0 }
  0x63   : > { %v574_v19 = vpack.c.bf16 %v275_v18, %v274_v17  ;;  %v577_v22 = vpack.c.bf16 %v277_v21, %v276_v20  ;;  %v278_v23 = vld [vmem:[#allocation5 + $0x70] sm:$0xff]  ;;  %v279_v24 = vld [vmem:[#allocation5 + $0x78] sm:$0xff]  ;;  %s800_s15 = smov [#allocation7]  }
  0x64   : > { %v580_v25 = vpack.c.bf16 %v279_v24, %v278_v23  ;;  %v263_v26 = vld [vmem:[%s961_s22] sm:$0xff]  ;;  %p707_p6 = pnand %p706_p11, %p1046_p0  ;;  %s709_s8 = sshll.u32 %s800_s15, 4  ;;  %s710_s8 = int_to_ptr.vmem [resolvable:$false] %s709_s8 }
  0x65   : > { %v501_v28 = vld [vmem:[%s1032_s2] ss:$0 sm:$0xff]  ;;  %s711_s9 = scalar_lea.vmem %s710_s8, 256  ;;  %p712_p13 = scmp.lt.s32.totalorder %s983_s11, %s710_s8 }
  0x66   : > { %p708_p10 = pneg %p707_p6  ;;  %p713_p3 = scmp.lt.s32.totalorder %s711_s9, %s705_s5 }
  0x68   : > { %p714_p7 = por %p713_p3, %p712_p13 }
  0x69   : > { %563 = vmatpush3.bf16.xpose.msra.mxu0 %v562_v7 }
  0x6a   : > { %564 = vmatprep.subr.bf16.mxu0 %v797_v0  ;;  %p715_p12 = pnand %p714_p7, %p708_p10 }
  0x71   : > { %566 = vmatpush3.bf16.xpose.msra.mxu0 %v565_v10 }
  0x72   : > { %567 = vmatprep.subr.bf16.mxu0 %v797_v0 }
  0x79   : > { %569 = vmatpush3.bf16.xpose.msra.mxu0 %v568_v13 }
  0x7a   : > { %570 = vmatprep.subr.bf16.mxu0 %v797_v0 }
  0x81   : > { %572 = vmatpush3.bf16.xpose.msra.mxu0 %v571_v16 }
  0x82   : > { %573 = vmatprep.subr.bf16.mxu0 %v797_v0 }
  0x89   : > { %575 = vmatpush3.bf16.xpose.msra.mxu0 %v574_v19 }
  0x8a   : > { %576 = vmatprep.subr.bf16.mxu0 %v797_v0 }
  0x91   : > { %578 = vmatpush3.bf16.xpose.msra.mxu0 %v577_v22 }
  0x92   : > { %579 = vmatprep.subr.bf16.mxu0 %v797_v0 }
  0x99   : > { %581 = vmatpush3.bf16.xpose.msra.mxu0 %v580_v25 }
  0xa0   : > { %556 = vmatmul.mubr.f32.vlgmr.msra.gmra.mrb[0].mxu0 %v263_v26 }
 0x173   : > { %v346_v27 = vpop.f32.mrb[0].mxu0 }
 0x174   : > { %v557_v29 = vpop.f32.mrb[1].mxu0  ;;  %v363_v30 = vadd.f32 %v501_v28, %v346_v27 }
 0x176   : > { %364 = vst [vmem:[%s250_s10] sm:$0xff] %v363_v30 }
 0x177   : > { %718 = shalt.err (!%p715_p12)
}
 0x178   : > { %s719_s30 = scalar_lea.hbm %s981_s6, 128  ;;  %s723_s4 = scalar_lea.hbm %s1033_s3, 256 }
 0x179   : > { %p720_p4 = scmp.ne.s32.totalorder %s981_s6, %s719_s30  ;;  %p724_p5 = scmp.lt.u32.totalorder %s981_s6, %s1033_s3 }
 0x17a   : > { %p725_p8 = scmp.lt.u32.totalorder %s723_s4, %s719_s30  ;;  %p727_p11 = scmp.lt.u32.totalorder %s719_s30, %s981_s6 }
 0x17b   : > { %p721_p1 = pnand %p720_p4, %p1046_p0 }
 0x17c   : > { %p726_p9 = por %p725_p8, %p724_p5 }
 0x17d   : > { %p722_p2 = pneg %p721_p1 }
 0x17e   : > { %p728_p6 = por %p727_p11, %p726_p9 }
 0x180   : > { %p729_p10 = pnand %p728_p6, %p722_p2 }
 0x182   : > { %732 = shalt.err (!%p729_p10)
}
 0x183   : > { %586 = dma.vmem_to_hbm [thread:$0]  (%p1046_p0), %s983_s11, 128, %s981_s6, %s366_s7  }
 0x184 PF: > { %s392_s24 = sand.u32 1, %s771_s12   ;;  %p1047_p13 = scmp.ne.s32.totalorder %s1040_s27, 0 }
 0x185   : > { %p1048_p3 = scmp.ge.s32.totalorder %s791_s17, 2  ;;  %s393_s28 = scalar_lea.sflag [#allocation4], %s392_s24 }
 0x187   : > { %p593_p7 = pnand %p1048_p3, %p1047_p13 }
 0x189   : > { %766 = dma.done.wait (!%p593_p7), %s393_s28, 128  }
 0x18a   : > { %768 = vsyncadd (!%p593_p7), %s393_s28, 4294967168  ;;  %s20_s17 = sadd.s32 1, %s791_s17   ;;  %s1049_s12 = smov %s775_s13 }
 0x18b   : > { %p17_p12 = scmp.ge.s32.totalorder %s20_s17, 4   ;;  %s1050_s13 = smov %s779_s14 }
 0x18c   : > { %s1051_s14 = smov %s883_s26  ;;  %s1052_s15 = smov %s787_s16 }
 0x18d   : > { %s1053_s16 = smov %s1055_s20  ;;  %19 = sbr.rel (!%p17_p12) target bundleno = 7 (0x7), region = 93 }
 0x194   :  { %398 = vsyncpa [#allocation3], 1 }
 0x195   :  { %400 = vsyncpa [#allocation3 + $0x1], 1 }
 0x196   :  { %401 = vsyncpa [#allocation6], 1 }
 0x197   :  { %402 = vsyncpa [#allocation4], 1 }
 0x198   :  { %404 = vsyncpa [#allocation4 + $0x1], 1 }

</bundles_post_ra>
